<compile_context>
chip_gen: v5e
topology: v5e:2x2
jax: 0.10.0
libtpu: 0.0.40
codegen_flags: <defaults>
</compile_context>

<pallas_src>
import math

import jax
import jax.numpy as jnp
from jax import lax
from jax.experimental import pallas as pl
from jax.experimental.pallas import tpu as pltpu

D_K = 64
D_V = 64
_SCALE = 1.0 / math.sqrt(D_K)


def _sdpa_kernel(q_ref, k_ref, v_ref, mask_ref, ctx_ref, attn_ref):
    # Block views:
    #   q:    (G, TQ, d_k)   k: (G, Lk, d_k)   v: (G, Lk, d_v)
    #   mask: (G or 1, TQ, Lk) bool, True == masked
    q = q_ref[...]
    k = k_ref[...]
    v = v_ref[...]

    # Fold 1/sqrt(d_k) into Q (touches TQ*d_k elements, not TQ*Lk).
    qs = q * jnp.asarray(_SCALE, dtype=q.dtype)

    # scores = Q @ K^T without materializing K^T: contract the feature axis of
    # both operands, batched over the head-group axis, f32 accumulation.
    scores = lax.dot_general(
        qs, k,
        dimension_numbers=(((2,), (2,)), ((0,), (0,))),
        preferred_element_type=jnp.float32,
    )  # (G, TQ, Lk) f32

    # masked_fill_(attn_mask, -1e9): bool mask used directly (no int convert).
    # A shared (1, TQ, Lk) mask broadcasts over the head-group axis for free.
    scores = jnp.where(mask_ref[...], jnp.float32(-1000000000.0), scores)

    # Numerically-stable softmax over Lk, all in f32. The denominator is only
    # (G, TQ, 1) elements so the exact reciprocal is effectively free.
    row_max = jnp.max(scores, axis=-1, keepdims=True)
    exps = jnp.exp(scores - row_max)
    denom = jnp.sum(exps, axis=-1, keepdims=True)
    attn = exps * pl.reciprocal(denom, approx=False)        # (G, TQ, Lk) f32

    # Single low-precision copy of attn, reused for both the attn@V matmul and
    # the attn writeback (one (G,TQ,Lk) convert pass instead of two).
    attn_lo = attn.astype(v.dtype)

    # context = attn @ V (contract Lk, batched over G), f32 accumulation.
    context = lax.dot_general(
        attn_lo, v,
        dimension_numbers=(((2,), (1,)), ((0,), (0,))),
        preferred_element_type=jnp.float32,
    )  # (G, TQ, d_v) f32

    attn_ref[...] = attn_lo.astype(attn_ref.dtype)  # no-op cast when dtypes match
    ctx_ref[...] = context.astype(ctx_ref.dtype)


def _hw_config():
    """Per-generation (head-group VMEM budget, vmem_limit_bytes, target TQ)."""
    try:
        vmem_cap = int(pltpu.get_tpu_info().vmem_capacity_bytes)
    except Exception:            # be conservative if the query fails
        vmem_cap = 64 << 20
    if vmem_cap <= (64 << 20):   # v7x-class: 64 MiB VMEM per TensorCore
        return 9 << 20, 48 << 20, 256
    return 20 << 20, 96 << 20, 512   # v5e / v6e: 128 MiB VMEM


def _plan_tiles(lq, lk, dk, dv, bh, in_es, out_es, budget_bytes, tq_target):
    """Choose (query tile TQ, padded Lq, heads-per-step G) under a VMEM budget."""

    def per_head(tq):
        # Pipeline blocks are double-buffered (inputs + outputs + bool mask)...
        io = 2 * (tq * dk * in_es        # Q block
                  + lk * dk * in_es      # K block
                  + lk * dv * in_es      # V block
                  + tq * lk * 1          # bool mask block (1 B/elem)
                  + tq * dv * out_es     # context out block
                  + tq * lk * out_es)    # attn out block
        # ...plus live in-kernel intermediates: scores/exps/attn in f32 and the
        # single low-precision attn copy.
        live = 3 * tq * lk * 4 + tq * lk * out_es
        return io + live

    # --- query tile (multiple of 32) and padded Lq ---
    if lq <= tq_target:
        tq, lq_pad = lq, lq                           # single full-Lq tile
    else:
        tq = None
        for t in range(tq_target, 31, -1):            # exact divisor of Lq
            if t % 32 == 0 and lq % t == 0 and per_head(t) <= budget_bytes:
                tq = t
                break
        if tq is None:                                # pad Lq instead of one huge tile
            tq = tq_target
            while tq > 32 and per_head(tq) > budget_bytes:
                tq -= 32
        lq_pad = pl.cdiv(lq, tq) * tq

    # --- head-group size: largest divisor of BH fitting the budget (>= 1) ---
    cap = max(1, min(bh, budget_bytes // max(per_head(tq), 1)))
    g = 1
    for cand in range(cap, 0, -1):
        if bh % cand == 0:
            g = cand
            break
    return tq, lq_pad, g


def scaled_dot_product_attention(Q, K, V, attn_mask):
    """Q: (B,H,Lq,d_k), K: (B,H,Lk,d_k), V: (B,H,Lk,d_v),
    attn_mask: (B|1, H|1, Lq, Lk), truthy == masked.

    Returns (context (B,H,Lq,d_v), attn (B,H,Lq,Lk)) in Q's dtype.
    """
    B, H, Lq, dk = Q.shape
    Lk = K.shape[2]
    dv = V.shape[3]
    assert dk == D_K and dv == D_V

    out_dtype = Q.dtype
    BH = B * H

    # Inputs stay in their native dtype (bf16 stays bf16 -> half the HBM read
    # traffic); the dots accumulate in f32 via preferred_element_type.
    q = Q.reshape(BH, Lq, dk)
    k = K.reshape(BH, Lk, dk)
    v = V.reshape(BH, Lk, dv)

    # Mask stays 1-byte bool all the way into the kernel (no int8 round trip
    # through HBM). A (1,1,Lq,Lk) mask is kept un-broadcast and shared by all
    # head groups via its index_map.
    if attn_mask.dtype != jnp.bool_:
        attn_mask = attn_mask != 0
    mask_shared = attn_mask.shape[0] == 1 and attn_mask.shape[1] == 1
    if mask_shared:
        m = attn_mask.reshape(1, Lq, Lk)
    else:
        m = jnp.broadcast_to(attn_mask, (B, H, Lq, Lk)).reshape(BH, Lq, Lk)

    in_es = jnp.dtype(q.dtype).itemsize
    out_es = jnp.dtype(out_dtype).itemsize
    budget, vmem_limit, tq_target = _hw_config()
    TQ, Lq_pad, G = _plan_tiles(Lq, Lk, dk, dv, BH, in_es, out_es,
                                budget, tq_target)

    if Lq_pad != Lq:                     # pad queries; padded rows sliced off
        pad = Lq_pad - Lq
        q = jnp.pad(q, ((0, 0), (0, pad), (0, 0)))
        m = jnp.pad(m, ((0, 0), (0, pad), (0, 0)))

    num_g = BH // G
    num_q = Lq_pad // TQ

    if mask_shared:
        mask_spec = pl.BlockSpec((1, TQ, Lk), lambda g, qi: (0, qi, 0))
    else:
        mask_spec = pl.BlockSpec((G, TQ, Lk), lambda g, qi: (g, qi, 0))

    # TODO(synk): single-buffer the K/V BlockSpecs (pipeline_mode=pl.Buffered(1))
    # once that path is reliably supported for pallas_call on all generations;
    # for now the double-buffered K/V footprint is accounted for in _plan_tiles.
    ctx, attn = pl.pallas_call(
        _sdpa_kernel,
        out_shape=(
            jax.ShapeDtypeStruct((BH, Lq_pad, dv), out_dtype),
            jax.ShapeDtypeStruct((BH, Lq_pad, Lk), out_dtype),
        ),
        grid_spec=pltpu.PrefetchScalarGridSpec(
            num_scalar_prefetch=0,
            grid=(num_g, num_q),
            in_specs=[
                pl.BlockSpec((G, TQ, dk), lambda g, qi: (g, qi, 0)),
                pl.BlockSpec((G, Lk, dk), lambda g, qi: (g, 0, 0)),
                pl.BlockSpec((G, Lk, dv), lambda g, qi: (g, 0, 0)),
                mask_spec,
            ],
            out_specs=[
                pl.BlockSpec((G, TQ, dv), lambda g, qi: (g, qi, 0)),
                pl.BlockSpec((G, TQ, Lk), lambda g, qi: (g, qi, 0)),
            ],
        ),
        compiler_params=pltpu.CompilerParams(
            # Head-group axis feeds megacore; the query-tile axis is sequential
            # so each core's K/V blocks stay resident across all its qi steps.
            dimension_semantics=("parallel", "arbitrary"),
            vmem_limit_bytes=vmem_limit,
        ),
    )(q, k, v, m)

    ctx = ctx[:, :Lq].reshape(B, H, Lq, dv)
    attn = attn[:, :Lq].reshape(B, H, Lq, Lk)
    return ctx, attn


def _reference(Q, K, V, attn_mask):
    scores = jnp.einsum(
        "bhqd,bhkd->bhqk", Q.astype(jnp.float32), K.astype(jnp.float32)
    ) / math.sqrt(D_K)
    scores = jnp.where(attn_mask, jnp.float32(-1000000000.0), scores)
    attn = jax.nn.softmax(scores, axis=-1)
    context = jnp.einsum("bhqk,bhkd->bhqd", attn, V.astype(jnp.float32))
    return context, attn


if __name__ == "__main__":
    key = jax.random.PRNGKey(0)
    kq, kk, kv = jax.random.split(key, 3)

    B, H, Lq, Lk = 2, 2, 8, 8
    Q = jax.random.normal(kq, (B, H, Lq, D_K), dtype=jnp.float32)
    K = jax.random.normal(kk, (B, H, Lk, D_K), dtype=jnp.float32)
    V = jax.random.normal(kv, (B, H, Lk, D_V), dtype=jnp.float32)

    # Causal-style mask (True = masked), like the transformer usage.
    causal = jnp.triu(jnp.ones((Lq, Lk), dtype=jnp.bool_), k=1)
    attn_mask = jnp.broadcast_to(causal, (B, H, Lq, Lk))

    ctx, attn = scaled_dot_product_attention(Q, K, V, attn_mask)
    jax.block_until_ready((ctx, attn))

    ref_ctx, ref_attn = _reference(Q, K, V, attn_mask)
    # Tolerance absorbs MXU precision differences for f32 matmuls.
    assert jnp.allclose(ctx, ref_ctx, atol=2e-3, rtol=2e-3)
    assert jnp.allclose(attn, ref_attn, atol=2e-3, rtol=2e-3)

    # Shared-mask fast path: (1,1,Lq,Lk) mask DMA'd once per query tile.
    ctx_s, attn_s = scaled_dot_product_attention(
        Q, K, V, causal.reshape(1, 1, Lq, Lk))
    jax.block_until_ready((ctx_s, attn_s))
    assert jnp.allclose(ctx_s, ctx, atol=1e-6, rtol=1e-6)
    assert jnp.allclose(attn_s, attn, atol=1e-6, rtol=1e-6)

    print("KERNEL_OK")
</pallas_src>

<mosaic_0001>
module attributes {stable_mosaic.version = 11 : i64} {
  func.func @_sdpa_kernel(%arg0: i32, %arg1: i32, %arg2: memref<4x8x64xf32, #tpu.memory_space<vmem>>, %arg3: memref<4x8x64xf32, #tpu.memory_space<vmem>>, %arg4: memref<4x8x64xf32, #tpu.memory_space<vmem>>, %arg5: memref<4x8x8xi32, #tpu.memory_space<vmem>>, %arg6: memref<4x8x64xf32, #tpu.memory_space<vmem>>, %arg7: memref<4x8x8xf32, #tpu.memory_space<vmem>>) attributes {dimension_semantics = [#tpu.dimension_semantics<parallel>, #tpu.dimension_semantics<arbitrary>], iteration_bounds = array<i64: 1, 1>, scalar_prefetch = 0 : i64, scratch_operands = 0 : i64, tpu.core_type = #tpu.core_type<tc>, window_params = [{transform_indices = @transform_0, window_bounds = array<i64: 4, 8, 64>}, {transform_indices = @transform_1, window_bounds = array<i64: 4, 8, 64>}, {transform_indices = @transform_2, window_bounds = array<i64: 4, 8, 64>}, {transform_indices = @transform_3, window_bounds = array<i64: 4, 8, 8>}, {transform_indices = @transform_4, window_bounds = array<i64: 4, 8, 64>}, {transform_indices = @transform_5, window_bounds = array<i64: 4, 8, 8>}]} {
    %c0 = arith.constant 0 : index
    %c0_0 = arith.constant 0 : index
    %c0_1 = arith.constant 0 : index
    %0 = vector.load %arg2[%c0, %c0_0, %c0_1] : memref<4x8x64xf32, #tpu.memory_space<vmem>>, vector<4x8x64xf32>
    %c0_2 = arith.constant 0 : index
    %c0_3 = arith.constant 0 : index
    %c0_4 = arith.constant 0 : index
    %1 = vector.load %arg3[%c0_2, %c0_3, %c0_4] : memref<4x8x64xf32, #tpu.memory_space<vmem>>, vector<4x8x64xf32>
    %c0_5 = arith.constant 0 : index
    %c0_6 = arith.constant 0 : index
    %c0_7 = arith.constant 0 : index
    %2 = vector.load %arg4[%c0_5, %c0_6, %c0_7] : memref<4x8x64xf32, #tpu.memory_space<vmem>>, vector<4x8x64xf32>
    %cst = arith.constant 1.250000e-01 : f32
    %3 = vector.broadcast %cst : f32 to vector<4x8x64xf32>
    %4 = arith.mulf %0, %3 : vector<4x8x64xf32>
    %cst_8 = arith.constant dense<0.000000e+00> : vector<4x8x8xf32>
    %5 = tpu.matmul %4, %1, %cst_8 {dimension_numbers = #tpu.dot_dimension_numbers<[2], [2], [1], [1], [0, 0, 0, 1, 1, 1], [0], [0]>} : vector<4x8x64xf32>, vector<4x8x64xf32>, vector<4x8x8xf32> -> vector<4x8x8xf32>
    %c0_9 = arith.constant 0 : index
    %c0_10 = arith.constant 0 : index
    %c0_11 = arith.constant 0 : index
    %6 = vector.load %arg5[%c0_9, %c0_10, %c0_11] : memref<4x8x8xi32, #tpu.memory_space<vmem>>, vector<4x8x8xi32>
    %cst_12 = arith.constant dense<0> : vector<4x8x8xi32>
    %7 = arith.cmpi ne, %6, %cst_12 : vector<4x8x8xi32>
    %cst_13 = arith.constant -1.000000e+09 : f32
    %8 = vector.broadcast %cst_13 : f32 to vector<4x8x8xf32>
    %9 = arith.select %7, %8, %5 : vector<4x8x8xi1>, vector<4x8x8xf32>
    %cst_14 = arith.constant dense<0xFF800000> : vector<4x8xf32>
    %10 = vector.multi_reduction <maximumf>, %9, %cst_14 [2] : vector<4x8x8xf32> to vector<4x8xf32>
    %11 = vector.shape_cast %10 : vector<4x8xf32> to vector<4x8x1xf32>
    %12 = vector.broadcast %11 : vector<4x8x1xf32> to vector<4x8x8xf32>
    %13 = arith.subf %9, %12 : vector<4x8x8xf32>
    %14 = math.exp %13 : vector<4x8x8xf32>
    %cst_15 = arith.constant dense<0.000000e+00> : vector<4x8xf32>
    %15 = vector.multi_reduction <add>, %14, %cst_15 [2] : vector<4x8x8xf32> to vector<4x8xf32>
    %16 = vector.shape_cast %15 : vector<4x8xf32> to vector<4x8x1xf32>
    %17 = tpu.reciprocal %16 : vector<4x8x1xf32> -> vector<4x8x1xf32>
    %18 = vector.broadcast %17 : vector<4x8x1xf32> to vector<4x8x8xf32>
    %19 = arith.mulf %14, %18 : vector<4x8x8xf32>
    %cst_16 = arith.constant dense<0.000000e+00> : vector<4x8x64xf32>
    %20 = tpu.matmul %19, %2, %cst_16 {dimension_numbers = #tpu.dot_dimension_numbers<[2], [1], [1], [2], [0, 0, 0, 1, 1, 2], [0], [0]>} : vector<4x8x8xf32>, vector<4x8x64xf32>, vector<4x8x64xf32> -> vector<4x8x64xf32>
    %c0_17 = arith.constant 0 : index
    %c0_18 = arith.constant 0 : index
    %c0_19 = arith.constant 0 : index
    %21 = vector.load %arg7[%c0_17, %c0_18, %c0_19] : memref<4x8x8xf32, #tpu.memory_space<vmem>>, vector<4x8x8xf32>
    tpu.vector_store %arg7[%c0_17, %c0_18, %c0_19], %19 {strides = array<i32>} : memref<4x8x8xf32, #tpu.memory_space<vmem>>, vector<4x8x8xf32>,
    %c0_20 = arith.constant 0 : index
    %c0_21 = arith.constant 0 : index
    %c0_22 = arith.constant 0 : index
    %22 = vector.load %arg6[%c0_20, %c0_21, %c0_22] : memref<4x8x64xf32, #tpu.memory_space<vmem>>, vector<4x8x64xf32>
    tpu.vector_store %arg6[%c0_20, %c0_21, %c0_22], %20 {strides = array<i32>} : memref<4x8x64xf32, #tpu.memory_space<vmem>>, vector<4x8x64xf32>,
    return
  }
  func.func @transform_0(%arg0: i32, %arg1: i32) -> (i32, i32, i32) {
    %c0_i32 = arith.constant 0 : i32
    %c0_i32_0 = arith.constant 0 : i32
    return %arg0, %arg1, %c0_i32 : i32, i32, i32
  }
  func.func @transform_1(%arg0: i32, %arg1: i32) -> (i32, i32, i32) {
    %c0_i32 = arith.constant 0 : i32
    %c0_i32_0 = arith.constant 0 : i32
    %c0_i32_1 = arith.constant 0 : i32
    return %arg0, %c0_i32, %c0_i32_0 : i32, i32, i32
  }
  func.func @transform_2(%arg0: i32, %arg1: i32) -> (i32, i32, i32) {
    %c0_i32 = arith.constant 0 : i32
    %c0_i32_0 = arith.constant 0 : i32
    %c0_i32_1 = arith.constant 0 : i32
    return %arg0, %c0_i32, %c0_i32_0 : i32, i32, i32
  }
  func.func @transform_3(%arg0: i32, %arg1: i32) -> (i32, i32, i32) {
    %c0_i32 = arith.constant 0 : i32
    %c0_i32_0 = arith.constant 0 : i32
    return %arg0, %arg1, %c0_i32 : i32, i32, i32
  }
  func.func @transform_4(%arg0: i32, %arg1: i32) -> (i32, i32, i32) {
    %c0_i32 = arith.constant 0 : i32
    %c0_i32_0 = arith.constant 0 : i32
    return %arg0, %arg1, %c0_i32 : i32, i32, i32
  }
  func.func @transform_5(%arg0: i32, %arg1: i32) -> (i32, i32, i32) {
    %c0_i32 = arith.constant 0 : i32
    %c0_i32_0 = arith.constant 0 : i32
    return %arg0, %arg1, %c0_i32 : i32, i32, i32
  }
}

</mosaic_0001>

<bundles_post_ra>
// kernel: tpu_custom_call.1
= control target key start
LH: loop header
LB: loop body
LE: loop exit
PB: predicated region body
PF: predicated region fallthrough
CT: control target
= control target key end

     0   :  { %11 = vsyncpa [#allocation3], 0  ;;  %s683_s0 = inlined_call_operand.vmem [shape: f32[4,8,64], index: 0, kind: input, shape index: {}]   ;;  %s684_s1 = inlined_call_operand.hbm [shape: f32[4,8,64], index: 1, kind: input, shape index: {}]   ;;  %s685_s2 = inlined_call_operand.hbm [shape: f32[4,8,64], index: 2, kind: input, shape index: {}]   ;;  %s686_s3 = inlined_call_operand.vmem [shape: s32[4,8,8], index: 3, kind: input, shape index: {}]   ;;  %s687_s4 = inlined_call_operand.hbm [shape: f32[4,8,64], index: 4, kind: output, shape index: {0}]   ;;  %s688_s5 = inlined_call_operand.hbm [shape: f32[4,8,8], index: 5, kind: output, shape index: {1}]  }
   0x1   :  { %12 = vsyncpa [#allocation6], 0 }
   0x2   :  { %13 = vsyncpa [#allocation4], 0 }
   0x3   :  { %14 = vsyncpa [#allocation9], 0  ;;  %s21_s20 = sshll.u32 %s684_s1, 4  ;;  %s559_s21 = smov [#allocation2]   ;;  %s22_s20 = int_to_ptr.hbm [resolvable:$true] %s21_s20 }
   0x4   :  { %s23_s22 = sshll.u32 %s559_s21, 4  ;;  %s34_s25 = sshll.u32 %s685_s2, 4  ;;  %s24_s22 = int_to_ptr.vmem [resolvable:$true] %s23_s22  ;;  %s35_s25 = int_to_ptr.hbm [resolvable:$true] %s34_s25 }
   0x5   :  { %s560_s26 = smov 128   ;;  %s561_s27 = smov 8  }
   0x6   :  { %29 = dma.hbm_to_vmem [thread:$0]  %s22_s20, 512, %s24_s22, [#allocation3], %s560_s26, %s560_s26, %s561_s27  }
   0x7   :  { %s562_s28 = smov [#allocation5]  }
   0x8   :  { %s36_s29 = sshll.u32 %s562_s28, 4  ;;  %s37_s29 = int_to_ptr.vmem [resolvable:$true] %s36_s29 }
   0x9   :  { %42 = dma.hbm_to_vmem [thread:$0]  %s35_s25, 512, %s37_s29, [#allocation6], %s560_s26, %s560_s26, %s561_s27  }
   0xa   :  { %551 = dma.done.wait [#allocation3], 512  }
   0xb   :  { %552 = vsyncadd [#allocation3], 4294966784 }
   0xc   :  { %553 = dma.done.wait [#allocation6], 512  }
   0xd   :  { %554 = vsyncadd [#allocation6], 4294966784  ;;  %vm69_vm0 = vcmask 523264   ;;  %v57_v0 = vld [vmem:[#allocation2] sm:$0xff]  ;;  %v59_v1 = vld [vmem:[#allocation2 + $0x10] sm:$0xff]  ;;  %vm186_vm2 = vcmask 64512  }
   0xe   :  { %v53_v2 = vld [vmem:[%s683_s0] sm:$0xff]  ;;  %421 = vmatpush.xpose.msk.msra.mxu0 %vm69_vm0, %v57_v0  ;;  %425 = vmatpush.xpose.msk.msra.mxu2 %vm69_vm0, %v59_v1  ;;  %v55_v4 = vld [vmem:[%s683_s0 + $0x10] sm:$0xff]  ;;  %v58_v5 = vld [vmem:[#allocation2 + $0x8] sm:$0xff]  ;;  %s402_s21 = sshll.u32 %s688_s5, 4  ;;  %s564_s22 = smov [#allocation7]   ;;  %s403_s21 = int_to_ptr.hbm [resolvable:$true] %s402_s21 }
   0xf   :  { %v65_v3 = vmul.f32 0.125, %v53_v2  ;;  %v60_v6 = vld [vmem:[#allocation2 + $0x18] sm:$0xff]  ;;  %v67_v7 = vmul.f32 0.125, %v55_v4  ;;  %423 = vmatpush.xpose.msk.msra.mxu1 %vm69_vm0, %v58_v5  ;;  %v54_v8 = vld [vmem:[%s683_s0 + $0x8] sm:$0xff]  ;;  %v174_v12 = vld [vmem:[%s686_s3] sm:$0xff]  ;;  %s387_s23 = sshll.u32 %s564_s22, 4  ;;  %s388_s23 = int_to_ptr.vmem [resolvable:$true] %s387_s23 }
  0x10   :  { %427 = vmatpush.xpose.msk.msra.mxu3 %vm69_vm0, %v60_v6  ;;  %v56_v9 = vld [vmem:[%s683_s0 + $0x18] sm:$0xff]  ;;  %v66_v10 = vmul.f32 0.125, %v54_v8  ;;  %vm178_vm1 = vcmp.ne.s32.totalorder %v174_v12, 0  ;;  %v175_v13 = vld [vmem:[%s686_s3 + $0x8] sm:$0xff]  ;;  %v176_v16 = vld [vmem:[%s686_s3 + $0x10] sm:$0xff]  ;;  %s389_s5 = sshll.u32 %s687_s4, 4  ;;  %s390_s5 = int_to_ptr.hbm [resolvable:$true] %s389_s5 }
  0x11   :  { %v68_v11 = vmul.f32 0.125, %v56_v9  ;;  %422 = vmatmul.msk.f32.vlgmr.msra.gmra.mxu0 %vm69_vm0, %v65_v3  ;;  %426 = vmatmul.msk.f32.vlgmr.msra.gmra.mxu2 %vm69_vm0, %v67_v7  ;;  %vm179_vm3 = vcmp.ne.s32.totalorder %v175_v13, 0  ;;  %vm180_vm4 = vcmp.ne.s32.totalorder %v176_v16, 0  ;;  %v177_v20 = vld [vmem:[%s686_s3 + $0x18] sm:$0xff]  ;;  %v61_v48 = vld [vmem:[#allocation5] sm:$0xff]  ;;  %v63_v49 = vld [vmem:[#allocation5 + $0x10] sm:$0xff] }
  0x12   :  { %424 = vmatmul.msk.f32.vlgmr.msra.gmra.mxu1 %vm69_vm0, %v66_v10  ;;  %vm181_vm5 = vcmp.ne.s32.totalorder %v177_v20, 0  ;;  %301 = vmatpush.msrb.mxu0 %v61_v48  ;;  %v62_v50 = vld [vmem:[#allocation5 + $0x8] sm:$0xff]  ;;  %v64_v51 = vld [vmem:[#allocation5 + $0x18] sm:$0xff]  ;;  %s563_s3 = smov [#allocation8]  }
  0x13   :  { %428 = vmatmul.msk.f32.vlgmr.msra.gmra.mxu3 %vm69_vm0, %v68_v11  ;;  %347 = vmatpush.msrb.mxu2 %v63_v49  ;;  %s400_s18 = sshll.u32 %s563_s3, 4  ;;  %s401_s18 = int_to_ptr.vmem [resolvable:$true] %s400_s18 }
  0x14   :  { %324 = vmatpush.msrb.mxu1 %v62_v50  ;;  %370 = vmatpush.msrb.mxu3 %v64_v51 }
  0x8e   :  { %v93_v14 = vpop.f32.mrf.mxu0 }
  0x8f   :  { %v182_v15 = vsel %vm178_vm1, -1e+09, %v93_v14  ;;  %v119_v18 = vpop.f32.mrf.mxu1 }
  0x90   :  { %v187_v17 = vsel %vm186_vm2, %v182_v15, -inf  ;;  %v183_v19 = vsel %vm179_vm3, -1e+09, %v119_v18 }
  0x91   :  { %188 = vmax.xlane.f32.xlu1 %v187_v17  ;;  %v190_v24 = vsel %vm186_vm2, %v183_v19, -inf }
  0x94   :  { %v145_v21 = vpop.f32.mrf.mxu2 }
  0x95   :  { %v184_v22 = vsel %vm180_vm4, -1e+09, %v145_v21 }
  0x96   :  { %v193_v23 = vsel %vm186_vm2, %v184_v22, -inf  ;;  %v171_v25 = vpop.f32.mrf.mxu3 }
  0x97   :  { %194 = vmax.xlane.f32.xlu0 %v193_v23  ;;  %v185_v26 = vsel %vm181_vm5, -1e+09, %v171_v25 }
  0x98   :  { %v196_v27 = vsel %vm186_vm2, %v185_v26, -inf }
  0x99   :  { %191 = vmax.xlane.f32.xlu1 %v190_v24 }
  0x9f   :  { %197 = vmax.xlane.f32.xlu0 %v196_v27 }
 0x104   :  { %v189_v28 = vpop.xlane.xlu1 %188 }
 0x105   :  { %v199_v29 = vsub.f32 %v182_v15, %v189_v28 }
 0x107   :  { %v203_v30 = vmul.f32 1.442695, %v199_v29 }
 0x109   :  { %439 = vpow2.f32 %v203_v30 }
 0x10a   :  { %v195_v31 = vpop.xlane.xlu0 %194 }
 0x10b   :  { %v201_v32 = vsub.f32 %v184_v22, %v195_v31 }
 0x10c   :  { %v192_v33 = vpop.xlane.xlu1 %191 }
 0x10d   :  { %v207_v34 = vmul.f32 1.442695, %v201_v32  ;;  %v200_v35 = vsub.f32 %v183_v19, %v192_v33 }
 0x10f   :  { %v440_v36 = vpop.eup %439  ;;  %441 = vpow2.f32 %v207_v34  ;;  %v205_v37 = vmul.f32 1.442695, %v200_v35 }
 0x110   :  { %v211_v38 = vsel %vm186_vm2, %v440_v36, 0.0 }
 0x111   :  { %443 = vpow2.f32 %v205_v37  ;;  %212 = vadd.xlane.f32.xlu0 %v211_v38 }
 0x112   :  { %v198_v39 = vpop.xlane.xlu0 %197 }
 0x113   :  { %v202_v40 = vsub.f32 %v185_v26, %v198_v39 }
 0x115   :  { %v644_v41 = vpop.eup %441  ;;  %v209_v42 = vmul.f32 1.442695, %v202_v40 }
 0x116   :  { %v217_v43 = vsel %vm186_vm2, %v644_v41, 0.0 }
 0x117   :  { %v648_v44 = vpop.eup %443  ;;  %445 = vpow2.f32 %v209_v42  ;;  %218 = vadd.xlane.f32.xlu2 %v217_v43 }
 0x118   :  { %v214_v45 = vsel %vm186_vm2, %v648_v44, 0.0 }
 0x119   :  { %215 = vadd.xlane.f32.xlu1 %v214_v45 }
 0x11d   :  { %v652_v46 = vpop.eup %445 }
 0x11e   :  { %v220_v47 = vsel %vm186_vm2, %v652_v46, 0.0 }
 0x11f   :  { %221 = vadd.xlane.f32.xlu2 %v220_v47 }
 0x184   :  { %v213_v52 = vpop.xlane.xlu0 %212 }
 0x185   :  { %447 = vrcp.f32 %v213_v52  ;;  %v234_v58 = vand.u32 2147483648, %v213_v52  ;;  %v232_v60 = vand.u32 2147483647, %v213_v52  ;;  %vm228_vm7 = vweird.f32 %v213_v52 }
 0x187   :  { %v235_v2 = vor.u32 1.1754944e-38, %v234_v58  ;;  %vm233_vm9 = vcmp.eq.f32.partialorder %v232_v60, 8.507059e+37 }
 0x18a   :  { %v219_v53 = vpop.xlane.xlu2 %218 }
 0x18b   :  { %v448_v54 = vpop.eup %447  ;;  %449 = vrcp.f32 %v219_v53  ;;  %v260_v6 = vand.u32 2147483647, %v219_v53  ;;  %v262_v7 = vand.u32 2147483648, %v219_v53  ;;  %vm256_vm11 = vweird.f32 %v219_v53 }
 0x18c   :  { %v224_v55 = vmul.f32 %v448_v54, %v213_v52  ;;  %v216_v56 = vpop.xlane.xlu1 %215  ;;  %vm229_vm6 = vweird.f32 %v448_v54 }
 0x18d   :  { %451 = vrcp.f32 %v216_v56  ;;  %vm230_vm8 = vmor %vm228_vm7, %vm229_vm6  ;;  %v248_v12 = vand.u32 2147483648, %v216_v56  ;;  %v246_v15 = vand.u32 2147483647, %v216_v56  ;;  %vm261_vm14 = vcmp.eq.f32.partialorder %v260_v6, 8.507059e+37 }
 0x18e   :  { %v225_v57 = vsub.f32 1.0, %v224_v55  ;;  %v263_v17 = vor.u32 1.1754944e-38, %v262_v7  ;;  %vm242_vm15 = vweird.f32 %v216_v56 }
 0x18f   :  { %v249_v21 = vor.u32 1.1754944e-38, %v248_v12  ;;  %vm247_vm3 = vcmp.eq.f32.partialorder %v246_v15, 8.507059e+37 }
 0x190   :  { %v226_v59 = vmul.f32 %v448_v54, %v225_v57 }
 0x191   :  { %v450_v61 = vpop.eup %449 }
 0x192   :  { %v227_v62 = vadd.f32 %v448_v54, %v226_v59  ;;  %v252_v63 = vmul.f32 %v450_v61, %v219_v53  ;;  %v222_v0 = vpop.xlane.xlu2 %221  ;;  %vm257_vm10 = vweird.f32 %v450_v61 }
 0x193   :  { %v452_v1 = vpop.eup %451  ;;  %453 = vrcp.f32 %v222_v0  ;;  %vm258_vm13 = vmor %vm256_vm11, %vm257_vm10  ;;  %v276_v26 = vand.u32 2147483648, %v222_v0  ;;  %v274_v29 = vand.u32 2147483647, %v222_v0  ;;  %vm270_vm5 = vweird.f32 %v222_v0 }
 0x194   :  { %v231_v3 = vsel %vm230_vm8, %v448_v54, %v227_v62  ;;  %v253_v4 = vsub.f32 1.0, %v252_v63  ;;  %v238_v5 = vmul.f32 %v452_v1, %v216_v56  ;;  %vm243_vm12 = vweird.f32 %v452_v1 }
 0x195   :  { %v236_v8 = vsel %vm233_vm9, %v235_v2, %v231_v3  ;;  %vm244_vm1 = vmor %vm242_vm15, %vm243_vm12  ;;  %v277_v32 = vor.u32 1.1754944e-38, %v276_v26  ;;  %vm275_vm7 = vcmp.eq.f32.partialorder %v274_v29, 8.507059e+37 }
 0x196   :  { %v254_v9 = vmul.f32 %v450_v61, %v253_v4  ;;  %v239_v10 = vsub.f32 1.0, %v238_v5  ;;  %v279_v11 = vmul.f32 %v440_v36, %v236_v8 }
 0x198   :  { %v255_v13 = vadd.f32 %v450_v61, %v254_v9  ;;  %v240_v14 = vmul.f32 %v452_v1, %v239_v10  ;;  %429 = vmatmul.msk.f32.vlgmr.msrb.gmra.mxu0 %vm186_vm2, %v279_v11  ;;  %375 = vst.msk [vmem:[#allocation8] sm:$0xff] %vm186_vm2, %v279_v11 }
 0x199   :  { %v454_v16 = vpop.eup %453 }
 0x19a   :  { %v241_v18 = vadd.f32 %v452_v1, %v240_v14  ;;  %v266_v19 = vmul.f32 %v454_v16, %v222_v0  ;;  %v259_v20 = vsel %vm258_vm13, %v450_v61, %v255_v13  ;;  %vm271_vm4 = vweird.f32 %v454_v16 }
 0x19b   :  { %v264_v22 = vsel %vm261_vm14, %v263_v17, %v259_v20  ;;  %vm272_vm6 = vmor %vm270_vm5, %vm271_vm4 }
 0x19c   :  { %v245_v23 = vsel %vm244_vm1, %v452_v1, %v241_v18  ;;  %v267_v24 = vsub.f32 1.0, %v266_v19  ;;  %v281_v25 = vmul.f32 %v644_v41, %v264_v22 }
 0x19d   :  { %v250_v27 = vsel %vm247_vm3, %v249_v21, %v245_v23 }
 0x19e   :  { %v268_v28 = vmul.f32 %v454_v16, %v267_v24  ;;  %431 = vmatmul.msk.f32.vlgmr.msrb.gmra.mxu2 %vm186_vm2, %v281_v25  ;;  %377 = vst.msk [vmem:[#allocation8 + $0x10] sm:$0xff] %vm186_vm2, %v281_v25  ;;  %v280_v30 = vmul.f32 %v648_v44, %v250_v27 }
 0x1a0   :  { %v269_v31 = vadd.f32 %v454_v16, %v268_v28  ;;  %430 = vmatmul.msk.f32.vlgmr.msrb.gmra.mxu1 %vm186_vm2, %v280_v30  ;;  %376 = vst.msk [vmem:[#allocation8 + $0x8] sm:$0xff] %vm186_vm2, %v280_v30 }
 0x1a2   :  { %v273_v33 = vsel %vm272_vm6, %v454_v16, %v269_v31 }
 0x1a3   :  { %v278_v34 = vsel %vm275_vm7, %v277_v32, %v273_v33 }
 0x1a4   :  { %v282_v35 = vmul.f32 %v652_v46, %v278_v34 }
 0x1a6   :  { %432 = vmatmul.msk.f32.vlgmr.msrb.gmra.mxu3 %vm186_vm2, %v282_v35  ;;  %378 = vst.msk [vmem:[#allocation8 + $0x18] sm:$0xff] %vm186_vm2, %v282_v35 }
 0x1a7   :  { %408 = dma.vmem_to_hbm [thread:$0]  %s401_s18, 512, %s403_s21, [#allocation9], %s560_s26, %s560_s26, %s561_s27  }
 0x215   :  { %v303_v36 = vpop.f32.mrf.mxu0 }
 0x216   :  { %379 = vst.msk [vmem:[#allocation7] sm:$0xff] %vm69_vm0, %v303_v36 }
 0x21d   :  { %v326_v37 = vpop.f32.mrf.mxu1 }
 0x21e   :  { %380 = vst.msk [vmem:[#allocation7 + $0x8] sm:$0xff] %vm69_vm0, %v326_v37 }
 0x221   :  { %v349_v38 = vpop.f32.mrf.mxu2 }
 0x222   :  { %381 = vst.msk [vmem:[#allocation7 + $0x10] sm:$0xff] %vm69_vm0, %v349_v38 }
 0x229   :  { %v372_v39 = vpop.f32.mrf.mxu3 }
 0x22a   :  { %382 = vst.msk [vmem:[#allocation7 + $0x18] sm:$0xff] %vm69_vm0, %v372_v39 }
 0x22b   :  { %395 = dma.vmem_to_hbm [thread:$0]  %s388_s23, 512, %s390_s5, [#allocation4], %s560_s26, %s560_s26, %s561_s27  }
 0x22c   :  { %555 = dma.done.wait [#allocation4], 512  }
 0x22d   :  { %556 = vsyncadd [#allocation4], 4294966784 }
 0x22e   :  { %557 = dma.done.wait [#allocation9], 512  }
 0x22f   :  { %558 = vsyncadd [#allocation9], 4294966784 }
 0x230   :  { %417 = vsyncpa [#allocation3], 1 }
 0x231   :  { %418 = vsyncpa [#allocation6], 1 }
 0x232   :  { %419 = vsyncpa [#allocation4], 1 }
 0x233   :  { %420 = vsyncpa [#allocation9], 1 }

</bundles_post_ra>
